<compile_context>
chip_gen: v6e
topology: v6e:2x2x1
jax: 0.10.0
libtpu: 0.0.40
codegen_flags: <defaults>
</compile_context>

<pallas_src>
import jax
import jax.numpy as jnp
from jax.experimental import pallas as pl
from jax.experimental.pallas import tpu as pltpu

IMAGE_SIZE = 784
HIDDEN_SIZE = 256


def discriminator_kernel(x_ref, w1_ref, b1_ref, w2_ref, b2_ref, out_ref):
    # ---- fc1: MXU matmul with bf16 operands, f32 accumulate ----
    x_bf16 = x_ref[...].astype(jnp.bfloat16)          # (TB, 784)
    h = jnp.dot(x_bf16, w1_ref[...],                  # w1 already bf16 (784, 256)
                preferred_element_type=jnp.float32)   # (TB, 256) f32
    h = jnp.maximum(h + b1_ref[...], 0.0)             # bias + ReLU in f32 (VPU)

    # ---- fc2: N=1 output -> multiply + cross-lane reduce (VPU/XLU), not MXU ----
    z = jnp.sum(h * w2_ref[...], axis=-1, keepdims=True)   # (TB, 1)
    z = z + b2_ref[0, 0]                                    # scalar bias from SMEM

    out_ref[...] = jax.nn.sigmoid(z).astype(out_ref.dtype)


def discriminator_forward(x, w1, b1, w2, b2, *, block_b=1024):
    """x: (B, 784) f32 -> (B, 1) f32.

    w1: (784, 256)  (pre-transposed PyTorch fc1.weight)
    b1: (256,)
    w2: (1, 256)    (PyTorch fc2.weight layout)
    b2: (1,) or scalar
    """
    B = x.shape[0]

    # Batch tile: <=1024 rows (fits v5e's 16 MiB default scoped VMEM and v7x's
    # 64 MiB physical VMEM with double buffering), sublane-aligned when tiled.
    TB = min(block_b, B)
    if TB < B:
        TB = max(8, (TB // 8) * 8)
    grid = (pl.cdiv(B, TB),)

    # Parameter staging: weights as bf16 for the MXU, biases / w2 row in f32.
    w1_bf16 = w1.astype(jnp.bfloat16)                          # (784, 256)
    b1_row = b1.reshape(1, HIDDEN_SIZE).astype(jnp.float32)    # (1, 256)
    w2_row = w2.reshape(1, HIDDEN_SIZE).astype(jnp.float32)    # (1, 256)
    b2_2d = jnp.asarray(b2, jnp.float32).reshape(1, 1)         # (1, 1) -> SMEM

    return pl.pallas_call(
        discriminator_kernel,
        out_shape=jax.ShapeDtypeStruct((B, 1), jnp.float32),
        grid_spec=pltpu.PrefetchScalarGridSpec(
            num_scalar_prefetch=0,
            grid=grid,
            in_specs=[
                # x: tiled along batch
                pl.BlockSpec((TB, IMAGE_SIZE), lambda i: (i, 0)),
                # weights/biases: constant block index -> stay resident in VMEM
                pl.BlockSpec((IMAGE_SIZE, HIDDEN_SIZE), lambda i: (0, 0)),
                pl.BlockSpec((1, HIDDEN_SIZE), lambda i: (0, 0)),
                pl.BlockSpec((1, HIDDEN_SIZE), lambda i: (0, 0)),
                # b2: scalar in SMEM (no VMEM tile / per-step DMA)
                pl.BlockSpec(memory_space=pltpu.MemorySpace.SMEM),
            ],
            out_specs=pl.BlockSpec((TB, 1), lambda i: (i, 0)),
        ),
        compiler_params=pltpu.CompilerParams(
            # batch tiles are independent -> shard across TCs on v7x
            dimension_semantics=("parallel",),
        ),
    )(x, w1_bf16, b1_row, w2_row, b2_2d)


def reference_forward_f32(x, w1, b1, w2, b2):
    """Pure f32 reference matching the PyTorch module."""
    h = jnp.maximum(x @ w1 + b1.reshape(1, -1), 0.0)
    z = h @ w2.reshape(1, -1).T + jnp.asarray(b2, jnp.float32).reshape(1, 1)
    return jax.nn.sigmoid(z)


def reference_forward_bf16(x, w1, b1, w2, b2):
    """Reference with the same bf16 fc1 matmul the kernel performs."""
    h = jnp.dot(x.astype(jnp.bfloat16), w1.astype(jnp.bfloat16),
                preferred_element_type=jnp.float32) + b1.reshape(1, -1)
    h = jnp.maximum(h, 0.0)
    z = jnp.sum(h * w2.reshape(1, -1), axis=-1, keepdims=True)
    z = z + jnp.asarray(b2, jnp.float32).reshape(1, 1)
    return jax.nn.sigmoid(z)


if __name__ == "__main__":
    key = jax.random.PRNGKey(0)
    k_x, k_w1, k_b1, k_w2, k_b2 = jax.random.split(key, 5)

    B = 8  # small batch for the self-test
    x = jax.random.normal(k_x, (B, IMAGE_SIZE), dtype=jnp.float32)

    # Deterministic init matching PyTorch nn.Linear bounds.
    bound1 = 1.0 / (IMAGE_SIZE ** 0.5)
    w1 = jax.random.uniform(k_w1, (IMAGE_SIZE, HIDDEN_SIZE), jnp.float32,
                            -bound1, bound1)
    b1 = jax.random.uniform(k_b1, (HIDDEN_SIZE,), jnp.float32, -bound1, bound1)

    bound2 = 1.0 / (HIDDEN_SIZE ** 0.5)
    w2 = jax.random.uniform(k_w2, (1, HIDDEN_SIZE), jnp.float32, -bound2, bound2)
    b2 = jax.random.uniform(k_b2, (1,), jnp.float32, -bound2, bound2)

    out = discriminator_forward(x, w1, b1, w2, b2)
    out = jax.block_until_ready(out)
    assert out.shape == (B, 1)

    # Tight check against a reference doing the same bf16 matmul.
    ref_bf16 = reference_forward_bf16(x, w1, b1, w2, b2)
    assert jnp.allclose(out, ref_bf16, atol=1e-4, rtol=1e-4), (out, ref_bf16)

    # Loose check against the pure-f32 PyTorch-equivalent reference
    # (bf16 operand quantization in fc1 accounts for the small difference).
    ref_f32 = reference_forward_f32(x, w1, b1, w2, b2)
    assert jnp.allclose(out, ref_f32, atol=1e-2), (out, ref_f32)

    print("KERNEL_OK")
</pallas_src>

<mosaic_0001>
module attributes {stable_mosaic.version = 11 : i64} {
  func.func @discriminator_kernel(%arg0: i32, %arg1: memref<8x784xf32, #tpu.memory_space<vmem>>, %arg2: memref<784x256xbf16, #tpu.memory_space<vmem>>, %arg3: memref<1x256xf32, #tpu.memory_space<vmem>>, %arg4: memref<1x256xf32, #tpu.memory_space<vmem>>, %arg5: memref<1x1xf32, #tpu.memory_space<smem>>, %arg6: memref<8x1xf32, #tpu.memory_space<vmem>>) attributes {dimension_semantics = [#tpu.dimension_semantics<parallel>], iteration_bounds = array<i64: 1>, scalar_prefetch = 0 : i64, scratch_operands = 0 : i64, tpu.core_type = #tpu.core_type<tc>, window_params = [{transform_indices = @transform_0, window_bounds = array<i64: 8, 784>}, {pipeline_mode = #tpu.pipeline_mode<synchronous>, transform_indices = @transform_1, window_bounds = array<i64: 784, 256>}, {pipeline_mode = #tpu.pipeline_mode<synchronous>, transform_indices = @transform_2, window_bounds = array<i64: 1, 256>}, {pipeline_mode = #tpu.pipeline_mode<synchronous>, transform_indices = @transform_3, window_bounds = array<i64: 1, 256>}, {transform_indices = @transform_4, window_bounds = array<i64: 1, 1>}, {transform_indices = @transform_5, window_bounds = array<i64: 8, 1>}]} {
    %c0 = arith.constant 0 : index
    %c0_0 = arith.constant 0 : index
    %0 = vector.load %arg1[%c0, %c0_0] : memref<8x784xf32, #tpu.memory_space<vmem>>, vector<8x784xf32>
    %1 = arith.truncf %0 : vector<8x784xf32> to vector<8x784xbf16>
    %c0_1 = arith.constant 0 : index
    %c0_2 = arith.constant 0 : index
    %2 = vector.load %arg2[%c0_1, %c0_2] : memref<784x256xbf16, #tpu.memory_space<vmem>>, vector<784x256xbf16>
    %cst = arith.constant dense<0.000000e+00> : vector<8x256xf32>
    %3 = tpu.matmul %1, %2, %cst {dimension_numbers = #tpu.dot_dimension_numbers<[1], [0], [0], [1], [0, 0, 1, 1], [], []>} : vector<8x784xbf16>, vector<784x256xbf16>, vector<8x256xf32> -> vector<8x256xf32>
    %c0_3 = arith.constant 0 : index
    %c0_4 = arith.constant 0 : index
    %4 = vector.load %arg3[%c0_3, %c0_4] : memref<1x256xf32, #tpu.memory_space<vmem>>, vector<1x256xf32>
    %5 = vector.broadcast %4 : vector<1x256xf32> to vector<8x256xf32>
    %6 = arith.addf %3, %5 : vector<8x256xf32>
    %cst_5 = arith.constant 0.000000e+00 : f32
    %7 = vector.broadcast %cst_5 : f32 to vector<8x256xf32>
    %8 = arith.maximumf %6, %7 : vector<8x256xf32>
    %c0_6 = arith.constant 0 : index
    %c0_7 = arith.constant 0 : index
    %9 = vector.load %arg4[%c0_6, %c0_7] : memref<1x256xf32, #tpu.memory_space<vmem>>, vector<1x256xf32>
    %10 = vector.broadcast %9 : vector<1x256xf32> to vector<8x256xf32>
    %11 = arith.mulf %8, %10 : vector<8x256xf32>
    %cst_8 = arith.constant dense<0.000000e+00> : vector<8xf32>
    %12 = vector.multi_reduction <add>, %11, %cst_8 [1] : vector<8x256xf32> to vector<8xf32>
    %13 = vector.shape_cast %12 : vector<8xf32> to vector<8x1xf32>
    %c0_9 = arith.constant 0 : index
    %c0_10 = arith.constant 0 : index
    %14 = memref.load %arg5[%c0_9, %c0_10] : memref<1x1xf32, #tpu.memory_space<smem>>
    %15 = vector.broadcast %14 : f32 to vector<8x1xf32>
    %16 = arith.addf %13, %15 : vector<8x1xf32>
    %17 = arith.negf %16 : vector<8x1xf32>
    %18 = math.exp %17 : vector<8x1xf32>
    %cst_11 = arith.constant 1.000000e+00 : f32
    %19 = vector.broadcast %cst_11 : f32 to vector<8x1xf32>
    %20 = arith.addf %19, %18 : vector<8x1xf32>
    %21 = arith.divf %19, %20 : vector<8x1xf32>
    %c0_12 = arith.constant 0 : index
    %c0_13 = arith.constant 0 : index
    %22 = vector.load %arg6[%c0_12, %c0_13] : memref<8x1xf32, #tpu.memory_space<vmem>>, vector<8x1xf32>
    tpu.vector_store %arg6[%c0_12, %c0_13], %21 {strides = array<i32>} : memref<8x1xf32, #tpu.memory_space<vmem>>, vector<8x1xf32>,
    return
  }
  func.func @transform_0(%arg0: i32) -> (i32, i32) {
    %c0_i32 = arith.constant 0 : i32
    %c0_i32_0 = arith.constant 0 : i32
    return %arg0, %c0_i32 : i32, i32
  }
  func.func @transform_1(%arg0: i32) -> (i32, i32) {
    %c0_i32 = arith.constant 0 : i32
    %c0_i32_0 = arith.constant 0 : i32
    %c0_i32_1 = arith.constant 0 : i32
    return %c0_i32, %c0_i32_0 : i32, i32
  }
  func.func @transform_2(%arg0: i32) -> (i32, i32) {
    %c0_i32 = arith.constant 0 : i32
    %c0_i32_0 = arith.constant 0 : i32
    %c0_i32_1 = arith.constant 0 : i32
    return %c0_i32, %c0_i32_0 : i32, i32
  }
  func.func @transform_3(%arg0: i32) -> (i32, i32) {
    %c0_i32 = arith.constant 0 : i32
    %c0_i32_0 = arith.constant 0 : i32
    %c0_i32_1 = arith.constant 0 : i32
    return %c0_i32, %c0_i32_0 : i32, i32
  }
  func.func @transform_4(%arg0: i32) -> (i32, i32) {
    %c0_i32 = arith.constant 0 : i32
    %c0_i32_0 = arith.constant 0 : i32
    %c0_i32_1 = arith.constant 0 : i32
    return %c0_i32, %c0_i32_0 : i32, i32
  }
  func.func @transform_5(%arg0: i32) -> (i32, i32) {
    %c0_i32 = arith.constant 0 : i32
    %c0_i32_0 = arith.constant 0 : i32
    return %arg0, %c0_i32 : i32, i32
  }
}

</mosaic_0001>

<bundles_post_ra>
// kernel: tpu_custom_call.1
= control target key start
LH: loop header
LB: loop body
LE: loop exit
PB: predicated region body
PF: predicated region fallthrough
CT: control target
= control target key end

     0   :  { %11 = vsyncpa [#allocation4], 0  ;;  %s1219_s0 = inlined_call_operand.hbm [shape: f32[8,784], index: 0, kind: input, shape index: {}]   ;;  %s1220_s1 = inlined_call_operand.hbm [shape: bf16[784,256], index: 1, kind: input, shape index: {}]   ;;  %s1221_s2 = inlined_call_operand.vmem [shape: f32[1,256], index: 2, kind: input, shape index: {}]   ;;  %s1222_s3 = inlined_call_operand.vmem [shape: f32[1,256], index: 3, kind: input, shape index: {}]   ;;  %s1223_s4 = inlined_call_operand.<no memory space> [shape: f32[1,1], index: 4, kind: input, shape index: {}]   ;;  %s1224_s5 = inlined_call_operand.vmem [shape: f32[8,1], index: 5, kind: output, shape index: {}]  }
   0x1   :  { %12 = vsyncpa [#allocation6], 0  ;;  %s1166_s18 = smov [#allocation3]   ;;  %s1167_s20 = smov [#allocation5]  }
   0x2   :  { %s19_s19 = sshll.u32 %s1166_s18, 4  ;;  %s28_s21 = sshll.u32 %s1167_s20, 4  ;;  %s20_s19 = int_to_ptr.vmem [resolvable:$true] %s19_s19  ;;  %s29_s21 = int_to_ptr.vmem [resolvable:$true] %s28_s21 }
   0x3   :  { %s1130_s22 = scalar_lea.vmem %s20_s19, 896  ;;  %p1135_p1 = scmp.lt.s32.totalorder %s20_s19, %s20_s19 }
   0x4   :  { %p1131_p0 = scmp.ne.s32.totalorder %s20_s19, %s1130_s22  ;;  %p1136_p2 = scmp.lt.s32.totalorder %s1130_s22, %s1130_s22 }
   0x6   :  { %p1137_p3 = por %p1136_p2, %p1135_p1 }
   0x8   :  { %p1138_p4 = pnand %p1137_p3, %p1131_p0 }
   0xa   :  { %1141 = shalt.err (!%p1138_p4)
}
   0xb   :  { %22 = dma.hbm_to_vmem [thread:$0]  %s1219_s0, 896, %s20_s19, [#allocation4]  }
   0xc   :  { %s1150_s25 = scalar_lea.vmem %s29_s21, 12544  ;;  %p1155_p6 = scmp.lt.s32.totalorder %s29_s21, %s29_s21 }
   0xd   :  { %p1151_p5 = scmp.ne.s32.totalorder %s29_s21, %s1150_s25  ;;  %p1156_p7 = scmp.lt.s32.totalorder %s1150_s25, %s1150_s25 }
   0xf   :  { %p1157_p8 = por %p1156_p7, %p1155_p6 }
  0x11   :  { %p1158_p9 = pnand %p1157_p8, %p1151_p5 }
  0x13   :  { %1161 = shalt.err (!%p1158_p9)
}
  0x14   :  { %s1168_s26 = smov 128   ;;  %s1169_s27 = smov 8  }
  0x15   :  { %34 = dma.hbm_to_vmem [thread:$0]  %s1220_s1, 12544, %s29_s21, [#allocation6], %s1168_s26, %s1168_s26, %s1169_s27  }
  0x16   :  { %1162 = dma.done.wait [#allocation4], 896  }
  0x17   :  { %1163 = vsyncadd [#allocation4], 4294966400 }
  0x18   :  { %1164 = dma.done.wait [#allocation6], 12544  }
  0x19   :  { %1165 = vsyncadd [#allocation6], 4294954752  ;;  %v971_v0 = vld [vmem:[#allocation5 + $0x74] ss:$8 sps:$4 sm:$0xff]   ;;  %v973_v1 = vld [vmem:[#allocation5 + $0x70] ss:$8 sps:$4 sm:$0xff]  }
  0x1a   :  { %666 = vmatprep.subr.bf16.mxu0 %v971_v0  ;;  %v974_v2 = vld [vmem:[#allocation5 + $0x174] ss:$8 sps:$4 sm:$0xff]   ;;  %v976_v3 = vld [vmem:[#allocation5 + $0x170] ss:$8 sps:$4 sm:$0xff]   ;;  %v977_v4 = vld [vmem:[#allocation5 + $0x64] ss:$8 sps:$4 sm:$0xff]  }
  0x1b   :  { %667 = vmatpush1.bf16.msra.mxu0 %v973_v1  ;;  %v979_v5 = vld [vmem:[#allocation5 + $0x60] ss:$8 sps:$4 sm:$0xff]   ;;  %707 = vmatprep.subr.bf16.mxu1 %v974_v2  ;;  %v980_v6 = vld [vmem:[#allocation5 + $0x164] ss:$8 sps:$4 sm:$0xff]   ;;  %v983_v8 = vld [vmem:[#allocation5 + $0x54] ss:$8 sps:$4 sm:$0xff]  }
  0x1c   :  { %708 = vmatpush1.bf16.msra.mxu1 %v976_v3  ;;  %668 = vmatprep.subr.bf16.mxu0 %v977_v4  ;;  %v982_v7 = vld [vmem:[#allocation5 + $0x160] ss:$8 sps:$4 sm:$0xff]   ;;  %v985_v9 = vld [vmem:[#allocation5 + $0x50] ss:$8 sps:$4 sm:$0xff]   ;;  %v986_v10 = vld [vmem:[#allocation5 + $0x154] ss:$8 sps:$4 sm:$0xff]  }
  0x1d   :  { %709 = vmatprep.subr.bf16.mxu1 %v980_v6  ;;  %v989_v11 = vld [vmem:[#allocation5 + $0x44] ss:$8 sps:$4 sm:$0xff]   ;;  %v988_v12 = vld [vmem:[#allocation5 + $0x150] ss:$8 sps:$4 sm:$0xff]   ;;  %v991_v14 = vld [vmem:[#allocation5 + $0x40] ss:$8 sps:$4 sm:$0xff]  }
  0x1e   :  { %v992_v13 = vld [vmem:[#allocation5 + $0x144] ss:$8 sps:$4 sm:$0xff]   ;;  %v995_v15 = vld [vmem:[#allocation5 + $0x34] ss:$8 sps:$4 sm:$0xff]   ;;  %v994_v16 = vld [vmem:[#allocation5 + $0x140] ss:$8 sps:$4 sm:$0xff]  }
  0x1f   :  { %669 = vmatpush1.bf16.msra.mxu0 %v979_v5  ;;  %v998_v17 = vld [vmem:[#allocation5 + $0x134] ss:$8 sps:$4 sm:$0xff]   ;;  %v997_v18 = vld [vmem:[#allocation5 + $0x30] ss:$8 sps:$4 sm:$0xff]   ;;  %v1001_v19 = vld [vmem:[#allocation5 + $0x24] ss:$8 sps:$4 sm:$0xff]  }
  0x20   :  { %670 = vmatprep.subr.bf16.mxu0 %v983_v8  ;;  %710 = vmatpush1.bf16.msra.mxu1 %v982_v7  ;;  %v1000_v20 = vld [vmem:[#allocation5 + $0x130] ss:$8 sps:$4 sm:$0xff]   ;;  %v1004_v21 = vld [vmem:[#allocation5 + $0x124] ss:$8 sps:$4 sm:$0xff]   ;;  %v1003_v22 = vld [vmem:[#allocation5 + $0x20] ss:$8 sps:$4 sm:$0xff]  }
  0x21   :  { %711 = vmatprep.subr.bf16.mxu1 %v986_v10  ;;  %v1007_v23 = vld [vmem:[#allocation5 + $0x14] ss:$8 sps:$4 sm:$0xff]   ;;  %v1006_v24 = vld [vmem:[#allocation5 + $0x120] ss:$8 sps:$4 sm:$0xff]   ;;  %v1009_v26 = vld [vmem:[#allocation5 + $0x10] ss:$8 sps:$4 sm:$0xff]  }
  0x22   :  { %v1010_v25 = vld [vmem:[#allocation5 + $0x114] ss:$8 sps:$4 sm:$0xff]   ;;  %v1013_v27 = vld [vmem:[#allocation5 + $0x4] ss:$8 sps:$4 sm:$0xff]   ;;  %v1012_v28 = vld [vmem:[#allocation5 + $0x110] ss:$8 sps:$4 sm:$0xff]  }
  0x23   :  { %671 = vmatpush1.bf16.msra.mxu0 %v985_v9  ;;  %v1016_v29 = vld [vmem:[#allocation5 + $0x104] ss:$8 sps:$4 sm:$0xff]   ;;  %v1015_v30 = vld [vmem:[#allocation5] ss:$8 sps:$4 sm:$0xff]   ;;  %v1019_v31 = vld [vmem:[#allocation5 + $0xf4] ss:$8 sps:$4 sm:$0xff]  }
  0x24   :  { %672 = vmatprep.subr.bf16.mxu0 %v989_v11  ;;  %712 = vmatpush1.bf16.msra.mxu1 %v988_v12  ;;  %v1018_v32 = vld [vmem:[#allocation5 + $0x100] ss:$8 sps:$4 sm:$0xff]   ;;  %v1022_v33 = vld [vmem:[#allocation5 + $0x1f4] ss:$8 sps:$4 sm:$0xff]   ;;  %v1021_v34 = vld [vmem:[#allocation5 + $0xf0] ss:$8 sps:$4 sm:$0xff]  }
  0x25   :  { %713 = vmatprep.subr.bf16.mxu1 %v992_v13  ;;  %v1025_v35 = vld [vmem:[#allocation5 + $0xe4] ss:$8 sps:$4 sm:$0xff]   ;;  %v1024_v36 = vld [vmem:[#allocation5 + $0x1f0] ss:$8 sps:$4 sm:$0xff]   ;;  %v1027_v38 = vld [vmem:[#allocation5 + $0xe0] ss:$8 sps:$4 sm:$0xff]  }
  0x26   :  { %v1028_v37 = vld [vmem:[#allocation5 + $0x1e4] ss:$8 sps:$4 sm:$0xff]   ;;  %v1031_v39 = vld [vmem:[#allocation5 + $0xd4] ss:$8 sps:$4 sm:$0xff]   ;;  %v1030_v40 = vld [vmem:[#allocation5 + $0x1e0] ss:$8 sps:$4 sm:$0xff]  }
  0x27   :  { %673 = vmatpush1.bf16.msra.mxu0 %v991_v14  ;;  %v1034_v41 = vld [vmem:[#allocation5 + $0x1d4] ss:$8 sps:$4 sm:$0xff]   ;;  %v1033_v42 = vld [vmem:[#allocation5 + $0xd0] ss:$8 sps:$4 sm:$0xff]   ;;  %v1037_v43 = vld [vmem:[#allocation5 + $0xc4] ss:$8 sps:$4 sm:$0xff]  }
  0x28   :  { %674 = vmatprep.subr.bf16.mxu0 %v995_v15  ;;  %714 = vmatpush1.bf16.msra.mxu1 %v994_v16  ;;  %v1036_v44 = vld [vmem:[#allocation5 + $0x1d0] ss:$8 sps:$4 sm:$0xff]   ;;  %v1040_v45 = vld [vmem:[#allocation5 + $0x1c4] ss:$8 sps:$4 sm:$0xff]   ;;  %v1039_v47 = vld [vmem:[#allocation5 + $0xc0] ss:$8 sps:$4 sm:$0xff]  }
  0x29   :  { %715 = vmatprep.subr.bf16.mxu1 %v998_v17  ;;  %v49_v46 = vld [vmem:[#allocation3 + $0x8] sm:$0xff]  ;;  %v51_v50 = vld [vmem:[#allocation3 + $0x18] sm:$0xff]  ;;  %v48_v4 = vld [vmem:[#allocation3] sm:$0xff]  ;;  %v1170_v17 = vmov 0   ;;  %vm662_vm0 = vcmask 130048   ;;  %vm858_vm1 = vcmask 7168  }
  0x2a   :  { %v56_v48 = vpack.c.bf16 %v49_v46, %v49_v46  ;;  %v1043_v49 = vld [vmem:[#allocation5 + $0xb4] ss:$8 sps:$4 sm:$0xff]   ;;  %v1042_v51 = vld [vmem:[#allocation5 + $0x1c0] ss:$8 sps:$4 sm:$0xff]   ;;  %v58_v52 = vpack.c.bf16 %v51_v50, %v51_v50  ;;  %v1045_v54 = vld [vmem:[#allocation5 + $0xb0] ss:$8 sps:$4 sm:$0xff]   ;;  %v55_v7 = vpack.c.bf16 %v48_v4, %v48_v4 }
  0x2b   :  { %675 = vmatpush1.bf16.msra.mxu0 %v997_v18  ;;  %v1046_v53 = vld [vmem:[#allocation5 + $0x1b4] ss:$8 sps:$4 sm:$0xff]   ;;  %v1049_v55 = vld [vmem:[#allocation5 + $0xa4] ss:$8 sps:$4 sm:$0xff]   ;;  %v1048_v56 = vld [vmem:[#allocation5 + $0x1b0] ss:$8 sps:$4 sm:$0xff]  }
  0x2c   :  { %676 = vmatprep.subr.bf16.mxu0 %v1001_v19  ;;  %716 = vmatpush1.bf16.msra.mxu1 %v1000_v20  ;;  %v1052_v57 = vld [vmem:[#allocation5 + $0x1a4] ss:$8 sps:$4 sm:$0xff]   ;;  %v1051_v58 = vld [vmem:[#allocation5 + $0xa0] ss:$8 sps:$4 sm:$0xff]   ;;  %v1055_v59 = vld [vmem:[#allocation5 + $0x94] ss:$8 sps:$4 sm:$0xff]  }
  0x2d   :  { %717 = vmatprep.subr.bf16.mxu1 %v1004_v21  ;;  %698 = vmatprep.mubr.bf16.mxu0 %v56_v48  ;;  %v1054_v60 = vld [vmem:[#allocation5 + $0x1a0] ss:$8 sps:$4 sm:$0xff]   ;;  %v1058_v61 = vld [vmem:[#allocation5 + $0x194] ss:$8 sps:$4 sm:$0xff]   ;;  %v1057_v62 = vld [vmem:[#allocation5 + $0x90] ss:$8 sps:$4 sm:$0xff]  }
  0x2e   :  { %739 = vmatprep.mubr.bf16.mxu1 %v58_v52  ;;  %v1061_v63 = vld [vmem:[#allocation5 + $0x84] ss:$8 sps:$4 sm:$0xff]   ;;  %v1060_v0 = vld [vmem:[#allocation5 + $0x190] ss:$8 sps:$4 sm:$0xff]   ;;  %v1063_v1 = vld [vmem:[#allocation5 + $0x80] ss:$8 sps:$4 sm:$0xff]  }
  0x2f   :  { %677 = vmatpush1.bf16.msra.mxu0 %v1003_v22  ;;  %v1064_v2 = vld [vmem:[#allocation5 + $0x184] ss:$8 sps:$4 sm:$0xff]   ;;  %v1066_v3 = vld [vmem:[#allocation5 + $0x180] ss:$8 sps:$4 sm:$0xff]   ;;  %v1069_v5 = vld [vmem:[#allocation5 + $0x274] ss:$8 sps:$4 sm:$0xff]  }
  0x30   :  { %678 = vmatprep.subr.bf16.mxu0 %v1007_v23  ;;  %718 = vmatpush1.bf16.msra.mxu1 %v1006_v24  ;;  %v50_v6 = vld [vmem:[#allocation3 + $0x10] sm:$0xff]  ;;  %v1072_v9 = vld [vmem:[#allocation5 + $0x264] ss:$8 sps:$4 sm:$0xff]   ;;  %v1112_v11 = vld [vmem:[#allocation5 + $0x300] ss:$8 sps:$4 sm:$0xff]  }
  0x31   :  { %719 = vmatprep.subr.bf16.mxu1 %v1010_v25  ;;  %v1067_v8 = vld [vmem:[#allocation5 + $0x270] ss:$8 sps:$4 sm:$0xff]   ;;  %v57_v10 = vpack.c.bf16 %v50_v6, %v50_v6  ;;  %v1114_v12 = vld [vmem:[#allocation5 + $0x304] ss:$8 sps:$4 sm:$0xff]   ;;  %v1070_v13 = vld [vmem:[#allocation5 + $0x260] ss:$8 sps:$4 sm:$0xff]  }
  0x32   :  { %v53_v14 = vld [vmem:[#allocation3 + $0x28] sm:$0xff]  ;;  %v54_v18 = vld [vmem:[#allocation3 + $0x30] sm:$0xff]  ;;  %v1078_v20 = vld [vmem:[#allocation5 + $0x244] ss:$8 sps:$4 sm:$0xff]  }
  0x33   :  { %679 = vmatpush1.bf16.msra.mxu0 %v1009_v26  ;;  %v1075_v15 = vld [vmem:[#allocation5 + $0x254] ss:$8 sps:$4 sm:$0xff]   ;;  %v60_v16 = vpack.c.bf16 %v53_v14, %v53_v14  ;;  %v1073_v19 = vld [vmem:[#allocation5 + $0x250] ss:$8 sps:$4 sm:$0xff]   ;;  %v61_v21 = vpack.c.bf16 %v54_v18, %v54_v18  ;;  %v1076_v22 = vld [vmem:[#allocation5 + $0x240] ss:$8 sps:$4 sm:$0xff]  }
  0x34   :  { %680 = vmatprep.subr.bf16.mxu0 %v1013_v27  ;;  %720 = vmatpush1.bf16.msra.mxu1 %v1012_v28  ;;  %v1081_v23 = vld [vmem:[#allocation5 + $0x234] ss:$8 sps:$4 sm:$0xff]   ;;  %v1079_v24 = vld [vmem:[#allocation5 + $0x230] ss:$8 sps:$4 sm:$0xff]   ;;  %v1084_v25 = vld [vmem:[#allocation5 + $0x224] ss:$8 sps:$4 sm:$0xff]  }
  0x35   :  { %721 = vmatprep.subr.bf16.mxu1 %v1016_v29  ;;  %v1082_v26 = vld [vmem:[#allocation5 + $0x220] ss:$8 sps:$4 sm:$0xff]   ;;  %v1087_v27 = vld [vmem:[#allocation5 + $0x214] ss:$8 sps:$4 sm:$0xff]   ;;  %v1085_v28 = vld [vmem:[#allocation5 + $0x210] ss:$8 sps:$4 sm:$0xff]  }
  0x36   :  { %v1090_v29 = vld [vmem:[#allocation5 + $0x204] ss:$8 sps:$4 sm:$0xff]   ;;  %v1115_v46 = vld [vmem:[#allocation5 + $0x280] ss:$8 sps:$4 sm:$0xff]  }
  0x37   :  { %681 = vmatpush1.bf16.msra.mxu0 %v1015_v30  ;;  %v1088_v30 = vld [vmem:[#allocation5 + $0x200] ss:$8 sps:$4 sm:$0xff]  }
  0x38   :  { %682 = vmatprep.subr.bf16.mxu0 %v1019_v31  ;;  %722 = vmatpush1.bf16.msra.mxu1 %v1018_v32  ;;  %v1093_v31 = vld [vmem:[#allocation5 + $0x2f4] ss:$8 sps:$4 sm:$0xff]   ;;  %v1091_v32 = vld [vmem:[#allocation5 + $0x2f0] ss:$8 sps:$4 sm:$0xff]  }
  0x39   :  { %723 = vmatprep.subr.bf16.mxu1 %v1022_v33  ;;  %v1096_v33 = vld [vmem:[#allocation5 + $0x2e4] ss:$8 sps:$4 sm:$0xff]  }
  0x3b   :  { %683 = vmatpush2.bf16.msra.mxu0 %v1021_v34  ;;  %v1094_v34 = vld [vmem:[#allocation5 + $0x2e0] ss:$8 sps:$4 sm:$0xff]  }
  0x3c   :  { %684 = vmatprep.subr.bf16.mxu0 %v1025_v35  ;;  %724 = vmatpush2.bf16.msra.mxu1 %v1024_v36  ;;  %v1099_v35 = vld [vmem:[#allocation5 + $0x2d4] ss:$8 sps:$4 sm:$0xff]   ;;  %v1097_v36 = vld [vmem:[#allocation5 + $0x2d0] ss:$8 sps:$4 sm:$0xff]  }
  0x3d   :  { %725 = vmatprep.subr.bf16.mxu1 %v1028_v37  ;;  %v1102_v37 = vld [vmem:[#allocation5 + $0x2c4] ss:$8 sps:$4 sm:$0xff]  }
  0x3f   :  { %685 = vmatpush2.bf16.msra.mxu0 %v1027_v38  ;;  %v1100_v38 = vld [vmem:[#allocation5 + $0x2c0] ss:$8 sps:$4 sm:$0xff]  }
  0x40   :  { %686 = vmatprep.subr.bf16.mxu0 %v1031_v39  ;;  %726 = vmatpush2.bf16.msra.mxu1 %v1030_v40  ;;  %v1105_v39 = vld [vmem:[#allocation5 + $0x2b4] ss:$8 sps:$4 sm:$0xff]   ;;  %v1103_v40 = vld [vmem:[#allocation5 + $0x2b0] ss:$8 sps:$4 sm:$0xff]  }
  0x41   :  { %727 = vmatprep.subr.bf16.mxu1 %v1034_v41  ;;  %v1108_v41 = vld [vmem:[#allocation5 + $0x2a4] ss:$8 sps:$4 sm:$0xff]  }
  0x43   :  { %687 = vmatpush2.bf16.msra.mxu0 %v1033_v42  ;;  %v1106_v42 = vld [vmem:[#allocation5 + $0x2a0] ss:$8 sps:$4 sm:$0xff]  }
  0x44   :  { %688 = vmatprep.subr.bf16.mxu0 %v1037_v43  ;;  %728 = vmatpush2.bf16.msra.mxu1 %v1036_v44  ;;  %v1111_v43 = vld [vmem:[#allocation5 + $0x294] ss:$8 sps:$4 sm:$0xff]   ;;  %v1109_v44 = vld [vmem:[#allocation5 + $0x290] ss:$8 sps:$4 sm:$0xff]  }
  0x45   :  { %729 = vmatprep.subr.bf16.mxu1 %v1040_v45  ;;  %v1117_v45 = vld [vmem:[#allocation5 + $0x284] ss:$8 sps:$4 sm:$0xff]  }
  0x47   :  { %689 = vmatpush2.bf16.msra.mxu0 %v1039_v47  ;;  %v52_v47 = vld [vmem:[#allocation3 + $0x20] sm:$0xff] }
  0x48   :  { %690 = vmatprep.subr.bf16.mxu0 %v1043_v49  ;;  %730 = vmatpush2.bf16.msra.mxu1 %v1042_v51  ;;  %v59_v48 = vpack.c.bf16 %v52_v47, %v52_v47 }
  0x49   :  { %731 = vmatprep.subr.bf16.mxu1 %v1046_v53 }
  0x4b   :  { %691 = vmatpush2.bf16.msra.mxu0 %v1045_v54 }
  0x4c   :  { %692 = vmatprep.subr.bf16.mxu0 %v1049_v55  ;;  %732 = vmatpush2.bf16.msra.mxu1 %v1048_v56 }
  0x4d   :  { %733 = vmatprep.subr.bf16.mxu1 %v1052_v57 }
  0x4f   :  { %693 = vmatpush2.bf16.msra.mxu0 %v1051_v58 }
  0x50   :  { %694 = vmatprep.subr.bf16.mxu0 %v1055_v59  ;;  %734 = vmatpush2.bf16.msra.mxu1 %v1054_v60 }
  0x51   :  { %735 = vmatprep.subr.bf16.mxu1 %v1058_v61  ;;  %v162_v61 = vlaneseq }
  0x53   :  { %695 = vmatpush2.bf16.msra.mxu0 %v1057_v62  ;;  %v163_v62 = vshrl.u32 %v162_v61, 7 }
  0x54   :  { %696 = vmatprep.subr.bf16.mxu0 %v1061_v63  ;;  %736 = vmatpush2.bf16.msra.mxu1 %v1060_v0  ;;  %v160_v0 = vld [vmem:[%s1221_s2] sm:$0x3] }
  0x55   :  { %737 = vmatprep.subr.bf16.mxu1 %v1064_v2  ;;  %v164_v63 = vsub.s32 0, %v163_v62 }
  0x57   :  { %697 = vmatpush2.bf16.msra.mxu0 %v1063_v1  ;;  %v168_v1 = vsub.s32 1, %v163_v62  ;;  %v165_v2 = vrot.slane %v160_v0, %v164_v63 }
  0x58   :  { %748 = vmatprep.subr.bf16.mxu0 %v1069_v5  ;;  %738 = vmatpush2.bf16.msra.mxu1 %v1066_v3 }
  0x59   :  { %803 = vmatprep.subr.bf16.mxu1 %v1114_v12  ;;  %v169_v3 = vrot.slane %v160_v0, %v168_v1 }
  0x5a   :  { %699 = vmatmul.mubr.bf16.vlgmr.msra.gmra.mxu0 %v55_v7 }
  0x5b   :  { %749 = vmatpush1.bf16.msra.mxu0 %v1067_v8  ;;  %740 = vmatmul.mubr.bf16.vlgmr.msra.gmra.mxu1 %v57_v10 }
  0x5c   :  { %750 = vmatprep.subr.bf16.mxu0 %v1072_v9  ;;  %804 = vmatpush1.bf16.msra.mxu1 %v1112_v11  ;;  %v832_v11 = vld [vmem:[%s1222_s3] sm:$0x3] }
  0x5d   :  { %821 = vmatprep.mubr.bf16.mxu1 %v1170_v17  ;;  %780 = vmatprep.mubr.bf16.mxu0 %v60_v16  ;;  %v837_v17 = vrot.slane %v832_v11, %v164_v63  ;;  %v841_v18 = vrot.slane %v832_v11, %v168_v1 }
  0x5f   :  { %751 = vmatpush1.bf16.msra.mxu0 %v1070_v13 }
  0x60   :  { %752 = vmatprep.subr.bf16.mxu0 %v1075_v15 }
  0x63   :  { %753 = vmatpush1.bf16.msra.mxu0 %v1073_v19  ;;  %964 = vmatmul.mubr.msk.bf16.vlgmr.msra.gmra.mxu1 %vm662_vm0, %v61_v21 }
  0x64   :  { %754 = vmatprep.subr.bf16.mxu0 %v1078_v20 }
  0x67   :  { %755 = vmatpush1.bf16.msra.mxu0 %v1076_v22 }
  0x68   :  { %756 = vmatprep.subr.bf16.mxu0 %v1081_v23 }
  0x6b   :  { %757 = vmatpush1.bf16.msra.mxu0 %v1079_v24  ;;  %v850_v24 = vstv %s1223_s4 }
  0x6c   :  { %758 = vmatprep.subr.bf16.mxu0 %v1084_v25 }
  0x6f   :  { %759 = vmatpush1.bf16.msra.mxu0 %v1082_v26 }
  0x70   :  { %760 = vmatprep.subr.bf16.mxu0 %v1087_v27 }
  0x73   :  { %761 = vmatpush1.bf16.msra.mxu0 %v1085_v28 }
  0x74   :  { %762 = vmatprep.subr.bf16.mxu0 %v1090_v29 }
  0x77   :  { %763 = vmatpush1.bf16.msra.mxu0 %v1088_v30 }
  0x78   :  { %764 = vmatprep.subr.bf16.mxu0 %v1093_v31 }
  0x7b   :  { %765 = vmatpush2.bf16.msra.mxu0 %v1091_v32 }
  0x7c   :  { %766 = vmatprep.subr.bf16.mxu0 %v1096_v33 }
  0x7f   :  { %767 = vmatpush2.bf16.msra.mxu0 %v1094_v34 }
  0x80   :  { %768 = vmatprep.subr.bf16.mxu0 %v1099_v35 }
  0x83   :  { %769 = vmatpush2.bf16.msra.mxu0 %v1097_v36 }
  0x84   :  { %770 = vmatprep.subr.bf16.mxu0 %v1102_v37 }
  0x87   :  { %771 = vmatpush2.bf16.msra.mxu0 %v1100_v38 }
  0x88   :  { %772 = vmatprep.subr.bf16.mxu0 %v1105_v39 }
  0x8b   :  { %773 = vmatpush2.bf16.msra.mxu0 %v1103_v40 }
  0x8c   :  { %774 = vmatprep.subr.bf16.mxu0 %v1108_v41 }
  0x8f   :  { %775 = vmatpush2.bf16.msra.mxu0 %v1106_v42 }
  0x90   :  { %776 = vmatprep.subr.bf16.mxu0 %v1111_v43 }
  0x93   :  { %777 = vmatpush2.bf16.msra.mxu0 %v1109_v44 }
  0x94   :  { %778 = vmatprep.subr.bf16.mxu0 %v1117_v45 }
  0x97   :  { %779 = vmatpush2.bf16.msra.mxu0 %v1115_v46 }
  0x9a   :  { %781 = vmatmul.mubr.bf16.vlgmr.msra.gmra.mxu0 %v59_v48 }
 0x11a   :  { %v700_v49 = vpop.f32.mrf.mxu0 }
 0x11b   :  { %v741_v51 = vpop.f32.mrf.mxu1  ;;  %v701_v4 = vadd.f32 %v700_v49, %v165_v2 }
 0x11c   :  { %v702_v50 = vpop.f32.mrf.mxu0 }
 0x11d   :  { %v743_v53 = vpop.f32.mrf.mxu1  ;;  %v703_v5 = vadd.f32 %v702_v50, %v169_v3  ;;  %v742_v6 = vadd.f32 %v741_v51, %v701_v4 }
 0x11e   :  { %v704_v52 = vpop.f32.mrf.mxu0 }
 0x11f   :  { %v745_v55 = vpop.f32.mrf.mxu1  ;;  %v744_v8 = vadd.f32 %v743_v53, %v703_v5 }
 0x120   :  { %v705_v54 = vpop.f32.mrf.mxu0 }
 0x121   :  { %v746_v56 = vpop.f32.mrf.mxu1 }
 0x123   :  { %v823_v57 = vpop.f32.mrf.mxu1 }
 0x125   :  { %v825_v58 = vpop.f32.mrf.mxu1 }
 0x127   :  { %v827_v59 = vpop.f32.mrf.mxu1 }
 0x129   :  { %v828_v60 = vpop.f32.mrf.mxu1 }
 0x15a   :  { %v782_v7 = vpop.f32.mrf.mxu0 }
 0x15b   :  { %v783_v9 = vadd.f32 %v782_v7, %v742_v6 }
 0x15c   :  { %v784_v10 = vpop.f32.mrf.mxu0 }
 0x15d   :  { %v824_v12 = vadd.f32 %v823_v57, %v783_v9  ;;  %v785_v13 = vadd.f32 %v784_v10, %v744_v8 }
 0x15e   :  { %v786_v14 = vpop.f32.mrf.mxu0 }
 0x15f   :  { %v830_v15 = vmax.f32 %v824_v12, 0.0  ;;  %v826_v16 = vadd.f32 %v825_v58, %v785_v13 }
 0x160   :  { %v787_v19 = vpop.f32.mrf.mxu0 }
 0x161   :  { %v831_v20 = vmax.f32 %v826_v16, 0.0  ;;  %v844_v21 = vmul.f32 %v837_v17, %v830_v15 }
 0x163   :  { %v845_v22 = vmul.f32 %v841_v18, %v831_v20 }
 0x165   :  { %v846_v23 = vadd.f32 %v845_v22, %v844_v21 }
 0x167   :  { %847 = vadd.xlane.f32.xlu0 %v846_v23 }
 0x1f0   :  { %v848_v25 = vpop.xlane.xlu0 %847 }
 0x1f1   :  { %v851_v26 = vadd.f32 %v850_v24, %v848_v25 }
 0x1f3   :  { %v965_v27 = vmul.f32 -1.442695, %v851_v26 }
 0x1f5   :  { %1118 = vpow2.f32 %v965_v27 }
 0x202   :  { %v1119_v28 = vpop.eup %1118 }
 0x203   :  { %v855_v29 = vadd.f32 1.0, %v1119_v28 }
 0x205   :  { %1120 = vrcp.f32 %v855_v29 }
 0x212   :  { %v1121_v30 = vpop.eup %1120 }
 0x213   :  { %859 = vst.msk [vmem:[%s1224_s5] sm:$0xff] %vm858_vm1, %v1121_v30 }
 0x214   :  { %864 = vsyncpa [#allocation4], 1 }
 0x215   :  { %865 = vsyncpa [#allocation6], 1 }

</bundles_post_ra>
